<compile_context>
chip_gen: v7x
topology: tpu7x:2x2x1
jax: 0.10.0
libtpu: 0.0.40
codegen_flags: <defaults>
</compile_context>

<pallas_src>
import jax
import jax.numpy as jnp
from jax import lax
from jax.experimental import pallas as pl
from jax.experimental.pallas import tpu as pltpu


# ----------------------------------------------------------------------------
# Kernel: one grid step processes a block of TB images laid out as (TB, C, HW).
# ----------------------------------------------------------------------------
def attention_kernel(x_ref, w1t_ref, w2t_ref, m_ref, out_ref):
    x = x_ref[...]                                   # (TB, C, HW) float32
    tb, c, hw = x.shape

    # ---------------- channel attention ----------------
    # adaptive avg / max pool over the (lane-dense) spatial axis -> (TB, C)
    avg = jnp.sum(x, axis=2) * (1.0 / hw)            # (TB, C)
    mx = jnp.max(x, axis=2)                          # (TB, C)

    # Batch both pooled paths through the shared MLP in one matmul pair:
    # (2*TB, C) @ (C, Cr) -> relu -> (2*TB, Cr) @ (Cr, C).
    p = jnp.concatenate([avg, mx], axis=0)           # (2*TB, C)
    h = jnp.maximum(
        jnp.dot(p, w1t_ref[...], preferred_element_type=jnp.float32), 0.0)
    q = jnp.dot(h, w2t_ref[...], preferred_element_type=jnp.float32)
    ca = jax.nn.sigmoid(q[:tb] + q[tb:])             # (TB, C)

    # Stage t1 = x * ca directly in the output buffer (saves one (TB, C, HW)
    # f32 temporary -> more VMEM headroom for larger TB).
    out_ref[...] = x * ca[:, :, None]                # t1
    t1 = out_ref[...]                                # (TB, C, HW)

    # ---------------- spatial attention ----------------
    avg_c = jnp.sum(t1, axis=1) * (1.0 / c)          # (TB, HW)  mean over channels
    max_c = jnp.max(t1, axis=1)                      # (TB, HW)  max over channels

    # 7x7 'SAME' conv over the 2-channel (avg, max) map expressed as ONE dense
    # matmul against the precomputed fused conv matrix (2*HW, HW), in bf16
    # operands with f32 accumulation.
    cat = jnp.concatenate([avg_c, max_c], axis=1).astype(jnp.bfloat16)  # (TB, 2*HW)
    sa_lin = jnp.dot(cat, m_ref[...], preferred_element_type=jnp.float32)
    sa = jax.nn.sigmoid(sa_lin)                      # (TB, HW)

    out_ref[...] = t1 * sa[:, None, :]               # (TB, C, HW)


# ----------------------------------------------------------------------------
# Wrapper helpers
# ----------------------------------------------------------------------------
def _vmem_capacity_bytes():
    """Physical per-TensorCore VMEM (bytes); conservative default if unknown."""
    try:
        info = pltpu.get_tpu_info()
        for attr in ("vmem_capacity_bytes", "vmem_size_bytes", "vmem_bytes"):
            v = getattr(info, attr, None)
            if v:
                return int(v)
    except Exception:
        pass
    return 64 << 20  # conservative: v7x has 64 MiB per TC


def _choose_tiling(B, C, HW, weight_bytes):
    """Pick (TB, vmem_limit_bytes) from a generation-aware VMEM budget."""
    phys = _vmem_capacity_bytes()
    small_vmem = phys <= (64 << 20)          # v7x: 64 MiB / TC, 2 TCs per chip
    # Raise the scoped VMEM ceiling (defaults are 16/32 MiB) but leave headroom
    # below physical for compiler-internal scratch.
    vmem_limit = min(int(phys * 0.7), 96 << 20)

    per_image = C * HW * 4                   # one f32 image in (C, HW) layout
    # 2x double-buffered input + 2x double-buffered output + ~3x temporaries.
    per_image_vmem = 7 * per_image
    budget = vmem_limit - 2 * weight_bytes - (2 << 20)
    tb = max(1, budget // per_image_vmem)
    tb = min(tb, 512 if small_vmem else 1024, B)
    if small_vmem and B >= 2:
        # v7x: keep >= 2 grid steps so "parallel" shards across both TCs.
        tb = min(tb, pl.cdiv(B, 2))
    return int(tb), int(vmem_limit)


def _spatial_conv_matrix(w_sa, H, W):
    """Build M with shape (2*H*W, H*W) such that, for the 2-channel flattened
    input concat([avg, max], axis=-1), (cat @ M) equals the flattened
    'SAME'-padded conv with w_sa (OIHW, O=1, I=2).  Built by pushing one-hot
    basis images through lax.conv, so it is exact by construction."""
    HW = H * W
    K = w_sa.shape[-1]
    pad = K // 2
    eye = jnp.eye(HW, dtype=jnp.float32).reshape(HW, H, W)
    zeros = jnp.zeros_like(eye)

    def response(basis):                             # basis: (HW, 2, H, W)
        r = lax.conv_general_dilated(
            basis, w_sa.astype(jnp.float32), window_strides=(1, 1),
            padding=((pad, pad), (pad, pad)),
            dimension_numbers=("NCHW", "OIHW", "NCHW"),
            precision=lax.Precision.HIGHEST)
        return r.reshape(HW, HW)                     # row i = response to pixel i

    m0 = response(jnp.stack([eye, zeros], axis=1))   # channel 0 (avg map)
    m1 = response(jnp.stack([zeros, eye], axis=1))   # channel 1 (max map)
    return jnp.concatenate([m0, m1], axis=0)         # (2*HW, HW)


def attention_forward(X, w1, w2, w_sa):
    """X: (bs, seq, C, H, W). w1: (Cr, C), w2: (C, Cr), w_sa: (1, 2, K, K)."""
    bs, seq, C, H, W = X.shape
    B = bs * seq
    HW = H * W

    x = X.astype(jnp.float32).reshape(B, C, HW)      # lane-dense layout
    w1t = jnp.asarray(w1, jnp.float32).T             # (C, Cr)
    w2t = jnp.asarray(w2, jnp.float32).T             # (Cr, C)
    M = _spatial_conv_matrix(w_sa, H, W).astype(jnp.bfloat16)   # (2*HW, HW)
    Cr = w1t.shape[1]

    weight_bytes = w1t.size * 4 + w2t.size * 4 + M.size * 2
    TB, vmem_limit = _choose_tiling(B, C, HW, weight_bytes)

    # Pad the batch up to a multiple of TB (padded rows are discarded) instead
    # of shrinking TB to a tiny divisor of B.
    n_steps = pl.cdiv(B, TB)
    B_pad = n_steps * TB
    if B_pad != B:
        x = jnp.pad(x, ((0, B_pad - B), (0, 0), (0, 0)))

    out = pl.pallas_call(
        attention_kernel,
        out_shape=jax.ShapeDtypeStruct((B_pad, C, HW), jnp.float32),
        grid=(n_steps,),
        in_specs=[
            pl.BlockSpec((TB, C, HW), lambda b: (b, 0, 0)),
            pl.BlockSpec((C, Cr), lambda b: (0, 0)),
            pl.BlockSpec((Cr, C), lambda b: (0, 0)),
            pl.BlockSpec((2 * HW, HW), lambda b: (0, 0)),
        ],
        out_specs=pl.BlockSpec((TB, C, HW), lambda b: (b, 0, 0)),
        compiler_params=pltpu.CompilerParams(
            dimension_semantics=("parallel",),
            vmem_limit_bytes=vmem_limit),
    )(x, w1t, w2t, M)
    return out[:B].reshape(bs, seq, C, H, W)


# ----------------------------------------------------------------------------
# Pure-JAX reference mirroring the PyTorch module
# ----------------------------------------------------------------------------
def attention_reference(X, w1, w2, w_sa):
    bs, seq, C, H, W = X.shape
    pad = w_sa.shape[-1] // 2
    x = X.reshape(-1, C, H, W)
    avg = x.mean(axis=(2, 3))                        # (B, C)
    mx = x.max(axis=(2, 3))                          # (B, C)

    def fc(v):
        return jnp.maximum(v @ w1.T, 0.0) @ w2.T

    ca = jax.nn.sigmoid(fc(avg) + fc(mx))            # (B, C)
    t1 = x * ca[:, :, None, None]
    cat = jnp.concatenate(
        [t1.mean(axis=1, keepdims=True), t1.max(axis=1, keepdims=True)], axis=1)
    sa = lax.conv_general_dilated(
        cat, w_sa, window_strides=(1, 1), padding=((pad, pad), (pad, pad)),
        dimension_numbers=("NCHW", "OIHW", "NCHW"))
    sa = jax.nn.sigmoid(sa)                          # (B, 1, H, W)
    return (sa * t1).reshape(bs, seq, C, H, W)


if __name__ == "__main__":
    bs, seq, chs, H, W = 2, 2, 8, 16, 16
    ratio = 1                                        # Attention() default ratio=1
    cr = chs // ratio
    KSIZE = 7

    key = jax.random.PRNGKey(0)
    kx, k1, k2, k3 = jax.random.split(key, 4)
    X = jax.random.normal(kx, (bs, seq, chs, H, W), dtype=jnp.float32)
    w1 = jax.random.normal(k1, (cr, chs), dtype=jnp.float32) * 0.1     # fc1 (1x1 conv)
    w2 = jax.random.normal(k2, (chs, cr), dtype=jnp.float32) * 0.1     # fc2 (1x1 conv)
    w_sa = jax.random.normal(k3, (1, 2, KSIZE, KSIZE), dtype=jnp.float32) * 0.1

    out = jax.block_until_ready(attention_forward(X, w1, w2, w_sa))

    ref = attention_reference(X, w1, w2, w_sa)
    assert out.shape == (bs, seq, chs, H, W)
    # Tolerance loosened vs. the pure-f32 path because the spatial-conv matmul
    # operands run in bf16 (f32 accumulation); observed error is ~1e-3.
    assert jnp.allclose(out, ref, rtol=2e-2, atol=2e-2), "mismatch vs reference"

    print("KERNEL_OK")
</pallas_src>

<mosaic_0001>
module attributes {stable_mosaic.version = 11 : i64} {
  func.func @attention_kernel(%arg0: i32, %arg1: memref<2x8x256xf32, #tpu.memory_space<vmem>>, %arg2: memref<8x8xf32, #tpu.memory_space<vmem>>, %arg3: memref<8x8xf32, #tpu.memory_space<vmem>>, %arg4: memref<512x256xbf16, #tpu.memory_space<vmem>>, %arg5: memref<2x8x256xf32, #tpu.memory_space<vmem>>) attributes {dimension_semantics = [#tpu.dimension_semantics<parallel>], iteration_bounds = array<i64: 2>, scalar_prefetch = 0 : i64, scratch_operands = 0 : i64, tpu.core_type = #tpu.core_type<tc>, window_params = [{transform_indices = @transform_0, window_bounds = array<i64: 2, 8, 256>}, {pipeline_mode = #tpu.pipeline_mode<synchronous>, transform_indices = @transform_1, window_bounds = array<i64: 8, 8>}, {pipeline_mode = #tpu.pipeline_mode<synchronous>, transform_indices = @transform_2, window_bounds = array<i64: 8, 8>}, {pipeline_mode = #tpu.pipeline_mode<synchronous>, transform_indices = @transform_3, window_bounds = array<i64: 512, 256>}, {transform_indices = @transform_4, window_bounds = array<i64: 2, 8, 256>}]} {
    %c0 = arith.constant 0 : index
    %c0_0 = arith.constant 0 : index
    %c0_1 = arith.constant 0 : index
    %0 = vector.load %arg1[%c0, %c0_0, %c0_1] : memref<2x8x256xf32, #tpu.memory_space<vmem>>, vector<2x8x256xf32>
    %cst = arith.constant dense<0.000000e+00> : vector<2x8xf32>
    %1 = vector.multi_reduction <add>, %0, %cst [2] : vector<2x8x256xf32> to vector<2x8xf32>
    %cst_2 = arith.constant 3.906250e-03 : f32
    %2 = vector.broadcast %cst_2 : f32 to vector<2x8xf32>
    %3 = arith.mulf %1, %2 : vector<2x8xf32>
    %cst_3 = arith.constant dense<0xFF800000> : vector<2x8xf32>
    %4 = vector.multi_reduction <maximumf>, %0, %cst_3 [2] : vector<2x8x256xf32> to vector<2x8xf32>
    %5 = tpu.concatenate %3, %4 in 0 : vector<2x8xf32>, vector<2x8xf32> -> vector<4x8xf32>
    %c0_4 = arith.constant 0 : index
    %c0_5 = arith.constant 0 : index
    %6 = vector.load %arg2[%c0_4, %c0_5] : memref<8x8xf32, #tpu.memory_space<vmem>>, vector<8x8xf32>
    %cst_6 = arith.constant dense<0.000000e+00> : vector<4x8xf32>
    %7 = tpu.matmul %5, %6, %cst_6 {dimension_numbers = #tpu.dot_dimension_numbers<[1], [0], [0], [1], [0, 0, 1, 1], [], []>} : vector<4x8xf32>, vector<8x8xf32>, vector<4x8xf32> -> vector<4x8xf32>
    %cst_7 = arith.constant 0.000000e+00 : f32
    %8 = vector.broadcast %cst_7 : f32 to vector<4x8xf32>
    %9 = arith.maximumf %7, %8 : vector<4x8xf32>
    %c0_8 = arith.constant 0 : index
    %c0_9 = arith.constant 0 : index
    %10 = vector.load %arg3[%c0_8, %c0_9] : memref<8x8xf32, #tpu.memory_space<vmem>>, vector<8x8xf32>
    %cst_10 = arith.constant dense<0.000000e+00> : vector<4x8xf32>
    %11 = tpu.matmul %9, %10, %cst_10 {dimension_numbers = #tpu.dot_dimension_numbers<[1], [0], [0], [1], [0, 0, 1, 1], [], []>} : vector<4x8xf32>, vector<8x8xf32>, vector<4x8xf32> -> vector<4x8xf32>
    %12 = vector.extract_strided_slice %11 {offsets = [0, 0], sizes = [2, 8], strides = [1, 1]} : vector<4x8xf32> to vector<2x8xf32>
    %13 = vector.extract_strided_slice %11 {offsets = [2, 0], sizes = [2, 8], strides = [1, 1]} : vector<4x8xf32> to vector<2x8xf32>
    %14 = arith.addf %12, %13 : vector<2x8xf32>
    %15 = arith.negf %14 : vector<2x8xf32>
    %16 = math.exp %15 : vector<2x8xf32>
    %cst_11 = arith.constant 1.000000e+00 : f32
    %17 = vector.broadcast %cst_11 : f32 to vector<2x8xf32>
    %18 = arith.addf %17, %16 : vector<2x8xf32>
    %19 = arith.divf %17, %18 : vector<2x8xf32>
    %20 = vector.shape_cast %19 : vector<2x8xf32> to vector<2x8x1xf32>
    %21 = vector.broadcast %20 : vector<2x8x1xf32> to vector<2x8x256xf32>
    %22 = arith.mulf %0, %21 : vector<2x8x256xf32>
    %c0_12 = arith.constant 0 : index
    %c0_13 = arith.constant 0 : index
    %c0_14 = arith.constant 0 : index
    %23 = vector.load %arg5[%c0_12, %c0_13, %c0_14] : memref<2x8x256xf32, #tpu.memory_space<vmem>>, vector<2x8x256xf32>
    tpu.vector_store %arg5[%c0_12, %c0_13, %c0_14], %22 {strides = array<i32>} : memref<2x8x256xf32, #tpu.memory_space<vmem>>, vector<2x8x256xf32>,
    %c0_15 = arith.constant 0 : index
    %c0_16 = arith.constant 0 : index
    %c0_17 = arith.constant 0 : index
    %24 = vector.load %arg5[%c0_15, %c0_16, %c0_17] : memref<2x8x256xf32, #tpu.memory_space<vmem>>, vector<2x8x256xf32>
    %cst_18 = arith.constant dense<0.000000e+00> : vector<2x256xf32>
    %25 = vector.multi_reduction <add>, %24, %cst_18 [1] : vector<2x8x256xf32> to vector<2x256xf32>
    %cst_19 = arith.constant 1.250000e-01 : f32
    %26 = vector.broadcast %cst_19 : f32 to vector<2x256xf32>
    %27 = arith.mulf %25, %26 : vector<2x256xf32>
    %cst_20 = arith.constant dense<0xFF800000> : vector<2x256xf32>
    %28 = vector.multi_reduction <maximumf>, %24, %cst_20 [1] : vector<2x8x256xf32> to vector<2x256xf32>
    %29 = tpu.concatenate %27, %28 in 1 : vector<2x256xf32>, vector<2x256xf32> -> vector<2x512xf32>
    %30 = arith.truncf %29 : vector<2x512xf32> to vector<2x512xbf16>
    %c0_21 = arith.constant 0 : index
    %c0_22 = arith.constant 0 : index
    %31 = vector.load %arg4[%c0_21, %c0_22] : memref<512x256xbf16, #tpu.memory_space<vmem>>, vector<512x256xbf16>
    %cst_23 = arith.constant dense<0.000000e+00> : vector<2x256xf32>
    %32 = tpu.matmul %30, %31, %cst_23 {dimension_numbers = #tpu.dot_dimension_numbers<[1], [0], [0], [1], [0, 0, 1, 1], [], []>} : vector<2x512xbf16>, vector<512x256xbf16>, vector<2x256xf32> -> vector<2x256xf32>
    %33 = arith.negf %32 : vector<2x256xf32>
    %34 = math.exp %33 : vector<2x256xf32>
    %cst_24 = arith.constant 1.000000e+00 : f32
    %35 = vector.broadcast %cst_24 : f32 to vector<2x256xf32>
    %36 = arith.addf %35, %34 : vector<2x256xf32>
    %37 = arith.divf %35, %36 : vector<2x256xf32>
    %38 = vector.shape_cast %37 : vector<2x256xf32> to vector<2x1x256xf32>
    %39 = vector.broadcast %38 : vector<2x1x256xf32> to vector<2x8x256xf32>
    %40 = arith.mulf %24, %39 : vector<2x8x256xf32>
    %c0_25 = arith.constant 0 : index
    %c0_26 = arith.constant 0 : index
    %c0_27 = arith.constant 0 : index
    %41 = vector.load %arg5[%c0_25, %c0_26, %c0_27] : memref<2x8x256xf32, #tpu.memory_space<vmem>>, vector<2x8x256xf32>
    tpu.vector_store %arg5[%c0_25, %c0_26, %c0_27], %40 {strides = array<i32>} : memref<2x8x256xf32, #tpu.memory_space<vmem>>, vector<2x8x256xf32>,
    return
  }
  func.func @transform_0(%arg0: i32) -> (i32, i32, i32) {
    %c0_i32 = arith.constant 0 : i32
    %c0_i32_0 = arith.constant 0 : i32
    %c0_i32_1 = arith.constant 0 : i32
    return %arg0, %c0_i32, %c0_i32_0 : i32, i32, i32
  }
  func.func @transform_1(%arg0: i32) -> (i32, i32) {
    %c0_i32 = arith.constant 0 : i32
    %c0_i32_0 = arith.constant 0 : i32
    %c0_i32_1 = arith.constant 0 : i32
    return %c0_i32, %c0_i32_0 : i32, i32
  }
  func.func @transform_2(%arg0: i32) -> (i32, i32) {
    %c0_i32 = arith.constant 0 : i32
    %c0_i32_0 = arith.constant 0 : i32
    %c0_i32_1 = arith.constant 0 : i32
    return %c0_i32, %c0_i32_0 : i32, i32
  }
  func.func @transform_3(%arg0: i32) -> (i32, i32) {
    %c0_i32 = arith.constant 0 : i32
    %c0_i32_0 = arith.constant 0 : i32
    %c0_i32_1 = arith.constant 0 : i32
    return %c0_i32, %c0_i32_0 : i32, i32
  }
  func.func @transform_4(%arg0: i32) -> (i32, i32, i32) {
    %c0_i32 = arith.constant 0 : i32
    %c0_i32_0 = arith.constant 0 : i32
    %c0_i32_1 = arith.constant 0 : i32
    return %arg0, %c0_i32, %c0_i32_0 : i32, i32, i32
  }
}

</mosaic_0001>

<bundles_post_ra>
// kernel: tpu_custom_call.1
= control target key start
LH: loop header
LB: loop body
LE: loop exit
PB: predicated region body
PF: predicated region fallthrough
CT: control target
= control target key end

     0   :  { %9 = vsyncpa [#allocation3], 0  ;;  %s2072_s0 = inlined_call_operand.hbm [shape: f32[4,8,256], index: 0, kind: input, shape index: {}]   ;;  %s2073_s1 = inlined_call_operand.hbm [shape: f32[8,8], index: 1, kind: input, shape index: {}]   ;;  %s2074_s2 = inlined_call_operand.hbm [shape: f32[8,8], index: 2, kind: input, shape index: {}]   ;;  %s2075_s3 = inlined_call_operand.hbm [shape: bf16[512,256], index: 3, kind: input, shape index: {}]   ;;  %s2076_s4 = inlined_call_operand.hbm [shape: f32[4,8,256], index: 4, kind: output, shape index: {}]  }
   0x1   :  { %11 = vsyncpa [#allocation3 + $0x1], 0 }
   0x2   :  { %12 = vsyncpa [#allocation6], 0 }
   0x3   :  { %13 = vsyncpa [#allocation9], 0 }
   0x4   :  { %14 = vsyncpa [#allocation4], 0 }
   0x5   :  { %16 = vsyncpa [#allocation4 + $0x1], 0  ;;  %s1747_s15 = smov 0   ;;  %s1749_s16 = smov 0  }
   0x6   :  { %s1751_s17 = smov 0   ;;  %s1753_s18 = smov 0  }
   0x7 LB: > { %s1768_s19 = sadd.s32 4294967295, %s1706_s18   ;;  %s1213_s20 = sadd.s32 4294967294, %s1706_s18   ;;  %s1706_s18 = sphi %s1753_s18, %s2099_s18   ;;  %s1702_s17 = sphi %s1751_s17, %s2098_s17   ;;  %s1698_s16 = sphi %s1749_s16, %s2097_s16   ;;  %s1694_s15 = sphi %s1747_s15, %s2096_s15  }
   0x8   : > { %p42_p0 = scmp.ne.s32.totalorder %s1698_s16, %s1694_s15  ;;  %p2077_p1 = scmp.eq.s32.totalorder %s1768_s19, 0 }
   0x9   : > { %p135_p3 = scmp.eq.s32.totalorder %s1213_s20, 1  ;;  %p1214_p5 = scmp.ge.s32.totalorder %s1706_s18, 1 }
   0xa   : > { %p1777_p4 = por %p2077_p1, %p42_p0  ;;  %p142_p7 = scmp.lt.s32.totalorder %s1706_s18, 3 }
   0xb   : > { %p1782_p6 = por %p135_p3, %p42_p0  ;;  %s1708_s24 = smov [#allocation5]  }
   0xc   : > { %s2080_s21 = scalar_select %p1777_p4, 1, 0 }
   0xd   : > { %s2081_s22 = scalar_select %p1782_p6, 1, 0 }
   0xe   : > { %p1787_p8 = pnand %p1214_p5, %p142_p7  ;;  %s155_s25 = sshll.u32 %s1708_s24, 4  ;;  %s156_s25 = int_to_ptr.vmem [resolvable:$true] %s155_s25 }
   0xf   : > { %s1709_s26 = smov [#allocation7]   ;;  %s1710_s29 = smov [#allocation8]  }
  0x10   : > { %s2082_s23 = scalar_select %p1787_p8, 1, 0 }
  0x11   : > { %p1340_p10 = pneg %p1787_p8  ;;  %s166_s27 = sshll.u32 %s1709_s26, 4  ;;  %s1800_s27 = int_to_ptr.vmem [resolvable:$true] %s166_s27 }
  0x12   : > { %s176_s30 = sshll.u32 %s1710_s29, 4  ;;  %s1518_s7 = scalar_lea.hbm %s2073_s1, 128  ;;  %s1802_s30 = int_to_ptr.vmem [resolvable:$true] %s176_s30 }
  0x13   : > { %p1796_p11 = pnand %p1340_p10, %p2077_p1  ;;  %p1519_p12 = scmp.ne.s32.totalorder %s2073_s1, %s1518_s7 }
  0x14   : > { %p1525_p5 = scmp.lt.u32.totalorder %s1518_s7, %s2073_s1 }
  0x15   : > { %p1812_p13 = pneg %p1796_p11 }
  0x17   : > { %p1521_p0 = pnand %p1812_p13, %p1519_p12 }
  0x19   : > { %p1522_p3 = pneg %p1521_p0 }
  0x1b   : > { %p1527_p7 = pnand %p1525_p5, %p1522_p3 }
  0x1d   : > { %1530 = shalt.err (!%p1527_p7)
}
  0x1e   : > { %s1531_s13 = scalar_lea.vmem %s156_s25, 128  ;;  %p1539_p2 = scmp.lt.s32.totalorder %s156_s25, %s156_s25 }
  0x1f   : > { %p1532_p10 = scmp.ne.s32.totalorder %s156_s25, %s1531_s13  ;;  %p1540_p6 = scmp.lt.s32.totalorder %s1531_s13, %s1531_s13 }
  0x21   : > { %p1534_p9 = pnand %p1532_p10, %p1812_p13  ;;  %p1541_p4 = por %p1540_p6, %p1539_p2 }
  0x23   : > { %p1535_p1 = pneg %p1534_p9 }
  0x25   : > { %p1542_p8 = pnand %p1541_p4, %p1535_p1 }
  0x27   : > { %1545 = shalt.err (!%p1542_p8)
}
  0x28   : > { %1343 = dma.hbm_to_vmem [thread:$0]  (!%p1796_p11), %s2073_s1, 128, %s156_s25, [#allocation6]  }
  0x29   : > { %s1546_s29 = scalar_lea.hbm %s2074_s2, 128 }
  0x2a   : > { %p1547_p9 = scmp.ne.s32.totalorder %s2074_s2, %s1546_s29  ;;  %p1553_p1 = scmp.lt.u32.totalorder %s1546_s29, %s2074_s2 }
  0x2c   : > { %p1549_p12 = pnand %p1547_p9, %p1812_p13 }
  0x2e   : > { %p1550_p2 = pneg %p1549_p12 }
  0x30   : > { %p1555_p4 = pnand %p1553_p1, %p1550_p2 }
  0x32   : > { %1558 = shalt.err (!%p1555_p4)
}
  0x33   : > { %s1559_s25 = scalar_lea.vmem %s1800_s27, 128  ;;  %p1567_p3 = scmp.lt.s32.totalorder %s1800_s27, %s1800_s27 }
  0x34   : > { %p1560_p6 = scmp.ne.s32.totalorder %s1800_s27, %s1559_s25  ;;  %p1568_p5 = scmp.lt.s32.totalorder %s1559_s25, %s1559_s25 }
  0x36   : > { %p1562_p8 = pnand %p1560_p6, %p1812_p13  ;;  %p1569_p7 = por %p1568_p5, %p1567_p3 }
  0x38   : > { %p1563_p0 = pneg %p1562_p8 }
  0x3a   : > { %p1570_p10 = pnand %p1569_p7, %p1563_p0 }
  0x3c   : > { %1573 = shalt.err (!%p1570_p10)
}
  0x3d   : > { %1346 = dma.hbm_to_vmem [thread:$0]  (!%p1796_p11), %s2074_s2, 128, %s1800_s27, [#allocation6]  }
  0x3e   : > { %s1574_s14 = scalar_lea.hbm %s2075_s3, 8192 }
  0x3f   : > { %p1575_p9 = scmp.ne.s32.totalorder %s2075_s3, %s1574_s14  ;;  %p1581_p1 = scmp.lt.u32.totalorder %s1574_s14, %s2075_s3 }
  0x41   : > { %p1577_p12 = pnand %p1575_p9, %p1812_p13 }
  0x43   : > { %p1578_p2 = pneg %p1577_p12 }
  0x45   : > { %p1583_p4 = pnand %p1581_p1, %p1578_p2 }
  0x47   : > { %1586 = shalt.err (!%p1583_p4)
}
  0x48   : > { %s1587_s27 = scalar_lea.vmem %s1802_s30, 8192  ;;  %p1595_p3 = scmp.lt.s32.totalorder %s1802_s30, %s1802_s30 }
  0x49   : > { %p1588_p6 = scmp.ne.s32.totalorder %s1802_s30, %s1587_s27  ;;  %p1596_p5 = scmp.lt.s32.totalorder %s1587_s27, %s1587_s27 }
  0x4b   : > { %p1590_p8 = pnand %p1588_p6, %p1812_p13  ;;  %p1597_p7 = por %p1596_p5, %p1595_p3 }
  0x4d   : > { %p1591_p0 = pneg %p1590_p8 }
  0x4f   : > { %p1598_p10 = pnand %p1597_p7, %p1591_p0 }
  0x51   : > { %1601 = shalt.err (!%p1598_p10)
}
  0x52   : > { %s1711_s5 = smov 128   ;;  %s1712_s10 = smov 8  }
  0x53   : > { %1349 = dma.hbm_to_vmem [thread:$0]  (!%p1796_p11), %s2075_s3, 8192, %s1802_s30, [#allocation9], %s1711_s5, %s1711_s5, %s1712_s10  }
  0x54   : > { %s1875_s8 = sadd.s32 1, %s1706_s18   ;;  %s29_s9 = sadd.s32 1, %s1702_s17 }
  0x55   : > { %s26_s25 = ssub.s32 %s1706_s18, %s1875_s8  ;;  %p36_p9 = scmp.ne.s32.totalorder %s1702_s17, %s1698_s16 }
  0x56   : > { %p27_p13 = scmp.eq.s32.totalorder %s26_s25, 0  ;;  %p37_p12 = scmp.eq.s32.totalorder %s1706_s18, 0 }
  0x57   : > { %p1361_p2 = scmp.lt.s32.totalorder %s1706_s18, 2  ;;  %p2085_p4 = scmp.eq.s32.totalorder %s1768_s19, 1 }
  0x58   : > { %s1885_s11 = scalar_select %p27_p13, %s1702_s17, %s29_s9  }
  0x59   : > { %p38_p1 = por %p37_p12, %p36_p9  ;;  %p1889_p6 = por %p2085_p4, %p36_p9 }
  0x5a   : > { %s190_s28 = sand.u32 1, %s1702_s17   ;;  %s1305_s13 = sshll.u32 %s1706_s18, 9 }
  0x5b   : > { %s1219_s30 = sshll.u32 %s190_s28, 5  ;;  %s1898_s24 = scalar_lea.hbm %s2072_s0, %s1305_s13 }
  0x5c   : > { %s194_s26 = scalar_lea.vmem [#allocation2], %s1219_s30  ;;  %p1900_p11 = pnand %p1361_p2, %p38_p1 }
  0x5d   : > { %s202_s29 = sshll.u32 %s194_s26, 4  ;;  %s1906_s5 = scalar_lea.sflag [#allocation3], %s190_s28  ;;  %s1904_s29 = int_to_ptr.vmem [resolvable:$true] %s202_s29 }
  0x5e   : > { %s1602_s10 = scalar_lea.hbm %s1898_s24, 512  ;;  %p1604_p0 = pneg %p1900_p11 }
  0x5f   : > { %p1603_p8 = scmp.ne.s32.totalorder %s1898_s24, %s1602_s10  ;;  %s1607_s25 = scalar_lea.hbm %s2072_s0, 1024 }
  0x60   : > { %p1608_p7 = scmp.lt.u32.totalorder %s1898_s24, %s2072_s0  ;;  %p1609_p10 = scmp.lt.u32.totalorder %s1607_s25, %s1602_s10 }
  0x61   : > { %p1605_p3 = pnand %p1604_p0, %p1603_p8  ;;  %p1611_p9 = scmp.lt.u32.totalorder %s1602_s10, %s1898_s24 }
  0x62   : > { %p1610_p13 = por %p1609_p10, %p1608_p7 }
  0x63   : > { %p1606_p5 = pneg %p1605_p3 }
  0x64   : > { %p1612_p12 = por %p1611_p9, %p1610_p13 }
  0x66   : > { %p1613_p2 = pnand %p1612_p12, %p1606_p5 }
  0x68   : > { %1616 = shalt.err (!%p1613_p2)
}
  0x69   : > { %s1617_s28 = scalar_lea.vmem %s1904_s29, 512  ;;  %s1713_s30 = smov [#allocation2]  }
  0x6a   : > { %p1618_p1 = scmp.ne.s32.totalorder %s1904_s29, %s1617_s28  ;;  %s1622_s14 = sshll.u32 %s1713_s30, 4  ;;  %s1623_s14 = int_to_ptr.vmem [resolvable:$false] %s1622_s14 }
  0x6b   : > { %s1624_s20 = scalar_lea.vmem %s1623_s14, 1024  ;;  %p1625_p3 = scmp.lt.s32.totalorder %s1904_s29, %s1623_s14 }
  0x6c   : > { %p1620_p4 = pnand %p1618_p1, %p1604_p0  ;;  %p1626_p7 = scmp.lt.s32.totalorder %s1624_s20, %s1617_s28 }
  0x6e   : > { %p1621_p8 = pneg %p1620_p4  ;;  %p1627_p10 = por %p1626_p7, %p1625_p3 }
  0x70   : > { %p1628_p13 = pnand %p1627_p10, %p1621_p8 }
  0x72   : > { %1631 = shalt.err (!%p1628_p13)
}
  0x73   : > { %s1714_s26 = smov 256   ;;  %s1715_s10 = smov 16  }
  0x74   : > { %1353 = dma.hbm_to_vmem [thread:$0]  (!%p1900_p11), %s1898_s24, 512, %s1904_s29, %s1906_s5, %s1714_s26, %s1714_s26, %s1715_s10  }
  0x75   : > { %p2088_p0 = scmp.ne.s32.totalorder %s2082_s23, 0 }
  0x76   : > { %s1937_s6 = sand.u32 (!%p2088_p0), 1, %s1698_s16   ;;  %p2089_p5 = scmp.ne.s32.totalorder (!%p2088_p0), %s2080_s21, 0 }
  0x77   : > { %214 = sbr.rel (%p2088_p0) target bundleno = 1151 (0x47f), region = 36  ;;  %s1224_s7 = sshll.u32 (!%p2088_p0), %s1937_s6, 5 }
  0x78   : > { %s217_s25 = scalar_lea.sflag (!%p2088_p0), [#allocation3], %s1937_s6  ;;  %s220_s9 = scalar_lea.vmem (!%p2088_p0), [#allocation2], %s1224_s7 }
  0x7e   : > { %1677 = dma.done.wait (%p2089_p5), %s217_s25, 512  }
  0x7f   : > { %1679 = vsyncadd (%p2089_p5), %s217_s25, 4294966784  ;;  %p2090_p11 = scmp.eq.s32.totalorder %s1768_s19, 0 }
  0x81   : > { %1681 = dma.done.wait (%p2090_p11), [#allocation6], 256   ;;  %p2091_p9 = pmov %p2090_p11 }
  0x83   : > { %1683 = vsyncadd (%p2091_p9), [#allocation6], 4294967040  ;;  %p2092_p12 = pmov %p2091_p9 }
  0x84   : > { %p2093_p2 = pmov %p2091_p9 }
  0x85   : > { %1685 = dma.done.wait (%p2092_p12), [#allocation9], 8192  }
  0x86   : > { %1687 = vsyncadd (%p2093_p2), [#allocation9], 4294959104  ;;  %v1955_v0 = vld [vmem:[%s220_s9] sm:$0xff]  ;;  %v1957_v1 = vld [vmem:[%s220_s9 + $0x8] sm:$0xff]  ;;  %v1716_v9 = vmov 0.0   ;;  %vm1717_vm0 = vmmov 0   ;;  %v279_v10 = vlaneseq }
  0x87   : > { %v1959_v2 = vld [vmem:[%s220_s9 + $0x10] sm:$0xff]  ;;  %v271_v3 = vmax.f32 %v1955_v0, %v1957_v1  ;;  %v263_v4 = vadd.f32 %v1957_v1, %v1955_v0  ;;  %v1965_v5 = vld [vmem:[%s220_s9 + $0x18] sm:$0xff]  ;;  %v307_v8 = vld [vmem:[#allocation5] sm:$0xff]  ;;  %1312 = vmatprep.subr.mxu0 %v1716_v9  ;;  %1314 = vmatprep.mubr.msk.f32.mxu0 %vm1717_vm0, %v1716_v9  ;;  %vm302_vm1 = vcmask 1043459   ;;  %vm289_vm2 = vcmask 1041409   ;;  %s1307_s21 = sshll.u32 %s1768_s19, 9 }
  0x88   : > { %v274_v6 = vmax.f32 %v1959_v2, %v1965_v5  ;;  %v266_v7 = vadd.f32 %v1965_v5, %v1959_v2  ;;  %1313 = vmatpush3.msra.mxu0 %v307_v8  ;;  %1317 = vmatprep.subr.mxu1 %v1716_v9  ;;  %v280_v11 = vand.u32 127, %v279_v10  ;;  %v1971_v12 = vshrl.u32 %v279_v10, 7  ;;  %v383_v27 = vld [vmem:[#allocation7] sm:$0xff]  ;;  %v1410_v31 = vld [vmem:[#allocation8 + $0x100] ss:$8 sps:$4 sm:$0xff]   ;;  %s256_s23 = scalar_lea.vmem [#allocation10], %s1224_s7  ;;  %s2024_s5 = scalar_lea.hbm %s2076_s4, %s1307_s21 }
  0x89   : > { %272 = vmax.xlane.f32.xlu1 %v271_v3  ;;  %264 = vadd.xlane.f32.xlu0 %v263_v4  ;;  %vm305_vm3 = vcmask 1041408   ;;  %vm308_vm4 = vcmask 64512   ;;  %v1412_v32 = vld [vmem:[#allocation8 + $0x104] ss:$8 sps:$4 sm:$0xff]   ;;  %v1413_v33 = vld [vmem:[#allocation8] ss:$8 sps:$4 sm:$0xff]  }
  0x8a   : > { %1319 = vmatprep.mubr.msk.f32.mxu1 %vm1717_vm0, %v1716_v9  ;;  %v283_v15 = vsub.s32 %v280_v11, %v1971_v12  ;;  %1318 = vmatpush3.msra.mxu1 %v383_v27  ;;  %v1415_v34 = vld [vmem:[#allocation8 + $0x4] ss:$8 sps:$4 sm:$0xff]   ;;  %v1418_v35 = vld [vmem:[#allocation8 + $0x114] ss:$8 sps:$4 sm:$0xff]   ;;  %v1416_v37 = vld [vmem:[#allocation8 + $0x110] ss:$8 sps:$4 sm:$0xff]  }
  0x8b   : > { %990 = vmatprep.subr.bf16.mxu0 %v1412_v32  ;;  %v1421_v36 = vld [vmem:[#allocation8 + $0x14] ss:$8 sps:$4 sm:$0xff]   ;;  %949 = vmatprep.subr.bf16.mxu1 %v1415_v34  ;;  %v1419_v38 = vld [vmem:[#allocation8 + $0x10] ss:$8 sps:$4 sm:$0xff]   ;;  %v1424_v39 = vld [vmem:[#allocation8 + $0x124] ss:$8 sps:$4 sm:$0xff]  }
  0x8c   : > { %v1427_v40 = vld [vmem:[#allocation8 + $0x24] ss:$8 sps:$4 sm:$0xff]   ;;  %v1422_v41 = vld [vmem:[#allocation8 + $0x120] ss:$8 sps:$4 sm:$0xff]   ;;  %v1430_v43 = vld [vmem:[#allocation8 + $0x134] ss:$8 sps:$4 sm:$0xff]  }
  0x8d   : > { %275 = vmax.xlane.f32.xlu1 %v274_v6  ;;  %267 = vadd.xlane.f32.xlu0 %v266_v7  ;;  %v1425_v42 = vld [vmem:[#allocation8 + $0x20] ss:$8 sps:$4 sm:$0xff]   ;;  %v1433_v44 = vld [vmem:[#allocation8 + $0x34] ss:$8 sps:$4 sm:$0xff]   ;;  %v1428_v45 = vld [vmem:[#allocation8 + $0x130] ss:$8 sps:$4 sm:$0xff]  }
  0x8e   : > { %v1431_v46 = vld [vmem:[#allocation8 + $0x30] ss:$8 sps:$4 sm:$0xff]   ;;  %v1436_v47 = vld [vmem:[#allocation8 + $0x144] ss:$8 sps:$4 sm:$0xff]   ;;  %v1434_v49 = vld [vmem:[#allocation8 + $0x140] ss:$8 sps:$4 sm:$0xff]  }
  0x8f   : > { %v1439_v48 = vld [vmem:[#allocation8 + $0x44] ss:$8 sps:$4 sm:$0xff]   ;;  %v1437_v50 = vld [vmem:[#allocation8 + $0x40] ss:$8 sps:$4 sm:$0xff]   ;;  %v1442_v51 = vld [vmem:[#allocation8 + $0x154] ss:$8 sps:$4 sm:$0xff]  }
  0x90   : > { %v1445_v52 = vld [vmem:[#allocation8 + $0x54] ss:$8 sps:$4 sm:$0xff]   ;;  %v1440_v53 = vld [vmem:[#allocation8 + $0x150] ss:$8 sps:$4 sm:$0xff]   ;;  %v1448_v55 = vld [vmem:[#allocation8 + $0x164] ss:$8 sps:$4 sm:$0xff]  }
  0x91   : > { %v1443_v54 = vld [vmem:[#allocation8 + $0x50] ss:$8 sps:$4 sm:$0xff]   ;;  %v1451_v56 = vld [vmem:[#allocation8 + $0x64] ss:$8 sps:$4 sm:$0xff]   ;;  %v1446_v57 = vld [vmem:[#allocation8 + $0x160] ss:$8 sps:$4 sm:$0xff]  }
  0x92   : > { %v1449_v58 = vld [vmem:[#allocation8 + $0x60] ss:$8 sps:$4 sm:$0xff]   ;;  %v1454_v59 = vld [vmem:[#allocation8 + $0x174] ss:$8 sps:$4 sm:$0xff]   ;;  %v1452_v61 = vld [vmem:[#allocation8 + $0x170] ss:$8 sps:$4 sm:$0xff]  }
  0x93   : > { %v1457_v60 = vld [vmem:[#allocation8 + $0x74] ss:$8 sps:$4 sm:$0xff]   ;;  %v1455_v62 = vld [vmem:[#allocation8 + $0x70] ss:$8 sps:$4 sm:$0xff]   ;;  %v1460_v63 = vld [vmem:[#allocation8 + $0x184] ss:$8 sps:$4 sm:$0xff]  }
  0x94   : > { %v1463_v3 = vld [vmem:[#allocation8 + $0x84] ss:$8 sps:$4 sm:$0xff]   ;;  %v1458_v4 = vld [vmem:[#allocation8 + $0x180] ss:$8 sps:$4 sm:$0xff]   ;;  %v1466_v7 = vld [vmem:[#allocation8 + $0x194] ss:$8 sps:$4 sm:$0xff]  }
  0x95   : > { %v1461_v6 = vld [vmem:[#allocation8 + $0x80] ss:$8 sps:$4 sm:$0xff]   ;;  %v1464_v8 = vld [vmem:[#allocation8 + $0x190] ss:$8 sps:$4 sm:$0xff]   ;;  %v1493_v32 = vld [vmem:[#allocation8 + $0xd4] ss:$8 sps:$4 sm:$0xff]  }
  0x96   : > { %v1482_v27 = vld [vmem:[#allocation8 + $0x1c0] ss:$8 sps:$4 sm:$0xff]   ;;  %v1496_v34 = vld [vmem:[#allocation8 + $0x1e4] ss:$8 sps:$4 sm:$0xff]   ;;  %s1111_s24 = sshll.u32 %s256_s23, 4  ;;  %s1097_s19 = scalar_lea.sflag [#allocation4], %s1937_s6  ;;  %s2026_s24 = int_to_ptr.vmem [resolvable:$true] %s1111_s24 }
  0x97   : > { %s1632_s13 = scalar_lea.vmem %s2026_s24, 512  ;;  %s1719_s28 = smov [#allocation10]  }
  0x98   : > { %p1633_p1 = scmp.ne.s32.totalorder %s2026_s24, %s1632_s13  ;;  %s1636_s30 = sshll.u32 %s1719_s28, 4  ;;  %s1637_s30 = int_to_ptr.vmem [resolvable:$false] %s1636_s30 }
  0x99   : > { %s1638_s14 = scalar_lea.vmem %s1637_s30, 1024  ;;  %p1639_p3 = scmp.lt.s32.totalorder %s2026_s24, %s1637_s30 }
  0x9a   : > { %p1634_p4 = pnand %p1633_p1, %p1889_p6  ;;  %p1640_p7 = scmp.lt.s32.totalorder %s1638_s14, %s1632_s13 }
  0x9c   : > { %p1635_p8 = pneg %p1634_p4  ;;  %p1641_p10 = por %p1640_p7, %p1639_p3 }
  0x9e   : > { %p1642_p13 = pnand %p1641_p10, %p1635_p8 }
 0x116   : > { %v273_v13 = vpop.xlane.xlu1 %272  ;;  %v265_v14 = vpop.xlane.xlu0 %264 }
 0x117   : > { %v269_v16 = vmul.f32 0.00390625, %v265_v14  ;;  %v297_v21 = vrot.slane %v273_v13, %v283_v15 }
 0x119   : > { %v284_v22 = vrot.slane %v269_v16, %v283_v15  ;;  %v1467_v16 = vld [vmem:[#allocation8 + $0x90] ss:$8 sps:$4 sm:$0xff]  }
 0x11a   : > { %v276_v17 = vpop.xlane.xlu1 %275  ;;  %v268_v18 = vpop.xlane.xlu0 %267 }
 0x11b   : > { %v301_v19 = vrot.slane %v276_v17, %v283_v15  ;;  %v270_v20 = vmul.f32 0.00390625, %v268_v18  ;;  %v1472_v17 = vld [vmem:[#allocation8 + $0x1a4] ss:$8 sps:$4 sm:$0xff]   ;;  %v1470_v18 = vld [vmem:[#allocation8 + $0x1a0] ss:$8 sps:$4 sm:$0xff]  }
 0x11d   : > { %v288_v23 = vrot.slane %v270_v20, %v283_v15  ;;  %v303_v24 = vsel %vm302_vm1, %v301_v19, %v297_v21  ;;  %v1469_v15 = vld [vmem:[#allocation8 + $0x94] ss:$8 sps:$4 sm:$0xff]   ;;  %v1475_v19 = vld [vmem:[#allocation8 + $0xa4] ss:$8 sps:$4 sm:$0xff]   ;;  %v1473_v20 = vld [vmem:[#allocation8 + $0xa0] ss:$8 sps:$4 sm:$0xff]  }
 0x11e   : > { %v1478_v21 = vld [vmem:[#allocation8 + $0x1b4] ss:$8 sps:$4 sm:$0xff]  }
 0x11f   : > { %v290_v25 = vsel %vm289_vm2, %v288_v23, %v284_v22  ;;  %v1476_v23 = vld [vmem:[#allocation8 + $0x1b0] ss:$8 sps:$4 sm:$0xff]  }
 0x120   : > { %v306_v26 = vsel %vm305_vm3, %v290_v25, %v303_v24  ;;  %v1481_v25 = vld [vmem:[#allocation8 + $0xb4] ss:$8 sps:$4 sm:$0xff]  }
 0x121   : > { %1315 = vmatmul.mubr.msk.f32.vlgmr.msra.gmra.mrb[0].mxu0 %vm308_vm4, %v306_v26  ;;  %v1479_v26 = vld [vmem:[#allocation8 + $0xb0] ss:$8 sps:$4 sm:$0xff]  }
 0x122   : > { %991 = vmatpush1.bf16.msra.mxu0 %v1410_v31  ;;  %v1490_v31 = vld [vmem:[#allocation8 + $0x1d4] ss:$8 sps:$4 sm:$0xff]  }
 0x123   : > { %992 = vmatprep.subr.bf16.mxu0 %v1418_v35  ;;  %v1491_v35 = vld [vmem:[#allocation8 + $0xd0] ss:$8 sps:$4 sm:$0xff]  }
 0x126   : > { %993 = vmatpush1.bf16.msra.mxu0 %v1416_v37  ;;  %v1976_v37 = vsub.s32 1, %v1971_v12 }
 0x127   : > { %994 = vmatprep.subr.bf16.mxu0 %v1424_v39  ;;  %v1494_v39 = vld [vmem:[#allocation8 + $0x1e0] ss:$8 sps:$4 sm:$0xff]  }
 0x12a   : > { %995 = vmatpush1.bf16.msra.mxu0 %v1422_v41 }
 0x12b   : > { %996 = vmatprep.subr.bf16.mxu0 %v1430_v43 }
 0x12e   : > { %997 = vmatpush1.bf16.msra.mxu0 %v1428_v45  ;;  %v1500_v45 = vld [vmem:[#allocation8 + $0x1f0] ss:$8 sps:$4 sm:$0xff]  }
 0x12f   : > { %998 = vmatprep.subr.bf16.mxu0 %v1436_v47  ;;  %v1503_v47 = vld [vmem:[#allocation8 + $0xf0] ss:$8 sps:$4 sm:$0xff]  }
 0x132   : > { %999 = vmatpush1.bf16.msra.mxu0 %v1434_v49 }
 0x133   : > { %1000 = vmatprep.subr.bf16.mxu0 %v1442_v51 }
 0x136   : > { %1001 = vmatpush1.bf16.msra.mxu0 %v1440_v53 }
 0x137   : > { %1002 = vmatprep.subr.bf16.mxu0 %v1448_v55 }
 0x13a   : > { %1003 = vmatpush1.bf16.msra.mxu0 %v1446_v57 }
 0x13b   : > { %1004 = vmatprep.subr.bf16.mxu0 %v1454_v59 }
 0x13e   : > { %1005 = vmatpush1.bf16.msra.mxu0 %v1452_v61 }
 0x13f   : > { %1006 = vmatprep.subr.bf16.mxu0 %v1460_v63 }
 0x142   : > { %1007 = vmatpush1.bf16.msra.mxu0 %v1458_v4 }
 0x143   : > { %1008 = vmatprep.subr.bf16.mxu0 %v1466_v7 }
 0x146   : > { %1009 = vmatpush1.bf16.msra.mxu0 %v1464_v8 }
 0x147   : > { %1010 = vmatprep.subr.bf16.mxu0 %v1472_v17 }
 0x14a   : > { %1011 = vmatpush1.bf16.msra.mxu0 %v1470_v18 }
 0x14b   : > { %1012 = vmatprep.subr.bf16.mxu0 %v1478_v21 }
 0x14e   : > { %1013 = vmatpush1.bf16.msra.mxu0 %v1476_v23 }
 0x1f4   : > { %v378_v28 = vpop.f32.mrb[0].mxu0 }
 0x1f5   : > { %v382_v29 = vmax.f32 %v378_v28, 0.0  ;;  %v1316_v30 = vpop.f32.mrb[1].mxu0  ;;  %v1484_v28 = vld [vmem:[#allocation8 + $0x1c4] ss:$8 sps:$4 sm:$0xff]  }
 0x1f6   : > { %v1487_v30 = vld [vmem:[#allocation8 + $0xc4] ss:$8 sps:$4 sm:$0xff]   ;;  %1014 = vmatprep.subr.bf16.mxu0 %v1484_v28 }
 0x1f7   : > { %1320 = vmatmul.mubr.msk.f32.vlgmr.msra.gmra.mrb[0].mxu1 %vm308_vm4, %v382_v29  ;;  %v1485_v29 = vld [vmem:[#allocation8 + $0xc0] ss:$8 sps:$4 sm:$0xff]   ;;  %1015 = vmatpush1.bf16.msra.mxu0 %v1482_v27 }
 0x1f8   : > { %950 = vmatpush1.bf16.msra.mxu1 %v1413_v33  ;;  %v1488_v33 = vld [vmem:[#allocation8 + $0x1d0] ss:$8 sps:$4 sm:$0xff]   ;;  %1016 = vmatprep.subr.bf16.mxu0 %v1490_v31 }
 0x1f9   : > { %951 = vmatprep.subr.bf16.mxu1 %v1421_v36  ;;  %v1499_v36 = vld [vmem:[#allocation8 + $0xe4] ss:$8 sps:$4 sm:$0xff]  }
 0x1fb   : > { %1017 = vmatpush1.bf16.msra.mxu0 %v1488_v33 }
 0x1fc   : > { %952 = vmatpush1.bf16.msra.mxu1 %v1419_v38  ;;  %v1979_v38 = vsub.s32 0, %v1971_v12  ;;  %1018 = vmatprep.subr.bf16.mxu0 %v1496_v34 }
 0x1fd   : > { %953 = vmatprep.subr.bf16.mxu1 %v1427_v40  ;;  %v1502_v40 = vld [vmem:[#allocation8 + $0x1f4] ss:$8 sps:$4 sm:$0xff]  }
 0x1ff   : > { %1019 = vmatpush1.bf16.msra.mxu0 %v1494_v39 }
 0x200   : > { %954 = vmatpush1.bf16.msra.mxu1 %v1425_v42  ;;  %v1497_v42 = vld [vmem:[#allocation8 + $0xe0] ss:$8 sps:$4 sm:$0xff]   ;;  %1020 = vmatprep.subr.bf16.mxu0 %v1502_v40 }
 0x201   : > { %955 = vmatprep.subr.bf16.mxu1 %v1433_v44 }
 0x203   : > { %1021 = vmatpush1.bf16.msra.mxu0 %v1500_v45 }
 0x204   : > { %956 = vmatpush1.bf16.msra.mxu1 %v1431_v46  ;;  %v1505_v46 = vld [vmem:[#allocation8 + $0xf4] ss:$8 sps:$4 sm:$0xff]  }
 0x205   : > { %957 = vmatprep.subr.bf16.mxu1 %v1439_v48 }
 0x208   : > { %958 = vmatpush1.bf16.msra.mxu1 %v1437_v50 }
 0x209   : > { %959 = vmatprep.subr.bf16.mxu1 %v1445_v52 }
 0x20c   : > { %960 = vmatpush1.bf16.msra.mxu1 %v1443_v54 }
 0x20d   : > { %961 = vmatprep.subr.bf16.mxu1 %v1451_v56 }
 0x210   : > { %962 = vmatpush1.bf16.msra.mxu1 %v1449_v58 }
 0x211   : > { %963 = vmatprep.subr.bf16.mxu1 %v1457_v60 }
 0x214   : > { %964 = vmatpush1.bf16.msra.mxu1 %v1455_v62 }
 0x215   : > { %965 = vmatprep.subr.bf16.mxu1 %v1463_v3 }
 0x218   : > { %966 = vmatpush1.bf16.msra.mxu1 %v1461_v6 }
 0x219   : > { %967 = vmatprep.subr.bf16.mxu1 %v1469_v15 }
 0x21c   : > { %968 = vmatpush1.bf16.msra.mxu1 %v1467_v16 }
 0x21d   : > { %969 = vmatprep.subr.bf16.mxu1 %v1475_v19 }
 0x220   : > { %970 = vmatpush1.bf16.msra.mxu1 %v1473_v20 }
 0x221   : > { %971 = vmatprep.subr.bf16.mxu1 %v1481_v25 }
 0x224   : > { %972 = vmatpush1.bf16.msra.mxu1 %v1479_v26 }
 0x225   : > { %973 = vmatprep.subr.bf16.mxu1 %v1487_v30 }
 0x228   : > { %974 = vmatpush1.bf16.msra.mxu1 %v1485_v29 }
 0x229   : > { %975 = vmatprep.subr.bf16.mxu1 %v1493_v32 }
 0x22c   : > { %976 = vmatpush1.bf16.msra.mxu1 %v1491_v35 }
 0x22d   : > { %977 = vmatprep.subr.bf16.mxu1 %v1499_v36 }
 0x230   : > { %978 = vmatpush1.bf16.msra.mxu1 %v1497_v42 }
 0x231   : > { %979 = vmatprep.subr.bf16.mxu1 %v1505_v46 }
 0x234   : > { %980 = vmatpush1.bf16.msra.mxu1 %v1503_v47 }
 0x2ca   : > { %v453_v9 = vpop.f32.mrb[0].mxu1 }
 0x2cb   : > { %v458_v10 = vrot.slane %v453_v9, 2  ;;  %v1321_v11 = vpop.f32.mrb[1].mxu1 }
 0x2cd   : > { %v460_v13 = vadd.f32 %v458_v10, %v453_v9 }
 0x2cf   : > { %v1231_v14 = vmul.f32 -1.442695, %v460_v13 }
 0x2d1   : > { %1506 = vpow2.f32 %v1231_v14 }
 0x2db   : > { %v1507_v22 = vpop.eup %1506 }
 0x2dc   : > { %v464_v24 = vadd.f32 1.0, %v1507_v22 }
 0x2de   : > { %1508 = vrcp.f32 %v464_v24 }
 0x2e8   : > { %v1509_v41 = vpop.eup %1508 }
 0x2e9   : > { %v477_v43 = vrot.slane %v1509_v41, %v1976_v37  ;;  %v470_v44 = vrot.slane %v1509_v41, %v1979_v38 }
 0x2eb   : > { %479 = vbcast.lane.b32.xlu1 %v477_v43, 256  ;;  %472 = vbcast.lane.b32.xlu0 %v470_v44, 256 }
 0x35d   : > { %v480_v48 = vpop.permute.xlu1 %479  ;;  %v473_v49 = vpop.permute.xlu0 %472 }
 0x35e   : > { %v1984_v50 = vmul.f32 %v480_v48, %v1959_v2  ;;  %v1987_v51 = vmul.f32 %v480_v48, %v1965_v5  ;;  %v1990_v52 = vmul.f32 %v473_v49, %v1955_v0  ;;  %v1993_v53 = vmul.f32 %v473_v49, %v1957_v1 }
 0x360   : > { %v499_v54 = vrot.slane %v1993_v53, 4  ;;  %v511_v55 = vrot.slane %v1987_v51, 4  ;;  %v493_v56 = vrot.slane %v1990_v52, 4  ;;  %v505_v57 = vrot.slane %v1984_v50, 4 }
 0x362   : > { %v528_v2 = vmax.f32 %v1993_v53, %v499_v54  ;;  %v540_v58 = vmax.f32 %v1987_v51, %v511_v55  ;;  %v522_v5 = vmax.f32 %v1990_v52, %v493_v56  ;;  %v534_v0 = vmax.f32 %v1984_v50, %v505_v57 }
 0x363   : > { %v500_v59 = vadd.f32 %v499_v54, %v1993_v53  ;;  %v512_v1 = vadd.f32 %v511_v55, %v1987_v51  ;;  %v494_v60 = vadd.f32 %v493_v56, %v1990_v52  ;;  %v506_v61 = vadd.f32 %v505_v57, %v1984_v50 }
 0x364   : > { %v529_v62 = vrot.slane %v528_v2, 2  ;;  %v541_v63 = vrot.slane %v540_v58, 2  ;;  %v523_v3 = vrot.slane %v522_v5, 2  ;;  %v535_v4 = vrot.slane %v534_v0, 2 }
 0x365   : > { %v501_v6 = vrot.slane %v500_v59, 2  ;;  %v513_v7 = vrot.slane %v512_v1, 2  ;;  %v495_v8 = vrot.slane %v494_v60, 2  ;;  %v507_v9 = vrot.slane %v506_v61, 2 }
 0x366   : > { %v530_v10 = vmax.f32 %v528_v2, %v529_v62  ;;  %v542_v11 = vmax.f32 %v540_v58, %v541_v63  ;;  %v524_v13 = vmax.f32 %v522_v5, %v523_v3  ;;  %v536_v14 = vmax.f32 %v534_v0, %v535_v4 }
 0x367   : > { %v502_v15 = vadd.f32 %v501_v6, %v500_v59  ;;  %v514_v16 = vadd.f32 %v513_v7, %v512_v1  ;;  %v496_v17 = vadd.f32 %v495_v8, %v494_v60  ;;  %v508_v18 = vadd.f32 %v507_v9, %v506_v61 }
 0x368   : > { %v531_v19 = vrot.slane %v530_v10, 1  ;;  %v543_v20 = vrot.slane %v542_v11, 1  ;;  %v525_v21 = vrot.slane %v524_v13, 1  ;;  %v537_v22 = vrot.slane %v536_v14, 1 }
 0x369   : > { %v503_v23 = vrot.slane %v502_v15, 1  ;;  %v515_v24 = vrot.slane %v514_v16, 1  ;;  %v497_v25 = vrot.slane %v496_v17, 1  ;;  %v509_v26 = vrot.slane %v508_v18, 1 }
 0x36a   : > { %v532_v27 = vmax.f32 %v530_v10, %v531_v19  ;;  %v544_v28 = vmax.f32 %v542_v11, %v543_v20  ;;  %v526_v29 = vmax.f32 %v524_v13, %v525_v21  ;;  %v538_v30 = vmax.f32 %v536_v14, %v537_v22 }
 0x36b   : > { %v504_v31 = vadd.f32 %v503_v23, %v502_v15  ;;  %v516_v32 = vadd.f32 %v515_v24, %v514_v16  ;;  %v498_v33 = vadd.f32 %v497_v25, %v496_v17  ;;  %v510_v34 = vadd.f32 %v509_v26, %v508_v18 }
 0x36c   : > { %v558_v35 = vsel %vm289_vm2, %v544_v28, %v532_v27  ;;  %v557_v36 = vsel %vm289_vm2, %v538_v30, %v526_v29  ;;  %v1718_v4 = vmov 1966171168  }
 0x36d   : > { %v564_v39 = vpack.c.bf16 %v558_v35, %v558_v35  ;;  %v563_v40 = vpack.c.bf16 %v557_v36, %v557_v36  ;;  %v518_v41 = vmul.f32 0.125, %v504_v31  ;;  %v520_v42 = vmul.f32 0.125, %v516_v32 }
 0x36e   : > { %v517_v43 = vmul.f32 0.125, %v498_v33  ;;  %v519_v44 = vmul.f32 0.125, %v510_v34  ;;  %v1047_v6 = vunpack.c.l.s4 %v1718_v4 }
 0x36f   : > { %1022 = vmatprep.mubr.bf16.mxu0 %v564_v39  ;;  %v550_v45 = vsel %vm289_vm2, %v520_v42, %v518_v41 }
 0x370   : > { %1023 = vmatmul.mubr.bf16.vlgmr.msra.gmra.mrb[4].mxu0 %v563_v40  ;;  %v562_v46 = vpack.c.bf16 %v550_v45, %v550_v45  ;;  %v549_v47 = vsel %vm289_vm2, %v519_v44, %v517_v43  ;;  %v1048_v7 = vunpack.c.0.s8 %v1047_v6 }
 0x371   : > { %v561_v48 = vpack.c.bf16 %v549_v47, %v549_v47 }
 0x372   : > { %981 = vmatprep.mubr.bf16.mxu1 %v562_v46  ;;  %v1051_v9 = vsub.s32 %v1048_v7, %v1971_v12 }
 0x373   : > { %982 = vmatmul.mubr.bf16.vlgmr.msra.gmra.mrb[4].mxu1 %v561_v48 }
 0x443   : > { %v1024_v49 = vpop.f32.mrb[4].mxu0 }
 0x444   : > { %v1026_v54 = vpop.f32.mrb[5].mxu0 }
 0x445   : > { %v1028_v55 = vpop.f32.mrb[6].mxu0 }
 0x446   : > { %v983_v56 = vpop.f32.mrb[4].mxu1  ;;  %v1029_v57 = vpop.f32.mrb[7].mxu0 }
 0x447   : > { %v1025_v2 = vadd.f32 %v1024_v49, %v983_v56  ;;  %v985_v58 = vpop.f32.mrb[5].mxu1 }
 0x448   : > { %v1027_v5 = vadd.f32 %v1026_v54, %v985_v58  ;;  %v987_v0 = vpop.f32.mrb[6].mxu1 }
 0x449   : > { %v1296_v59 = vmul.f32 -1.442695, %v1025_v2  ;;  %v988_v1 = vpop.f32.mrb[7].mxu1 }
 0x44a   : > { %v1297_v60 = vmul.f32 -1.442695, %v1027_v5 }
 0x44b   : > { %1510 = vpow2.f32 %v1296_v59 }
 0x44c   : > { %1512 = vpow2.f32 %v1297_v60 }
 0x455   : > { %v1511_v61 = vpop.eup %1510 }
 0x456   : > { %v1513_v62 = vpop.eup %1512  ;;  %v1037_v63 = vadd.f32 1.0, %v1511_v61 }
 0x457   : > { %v1038_v3 = vadd.f32 1.0, %v1513_v62 }
 0x458   : > { %1514 = vrcp.f32 %v1037_v63 }
 0x459   : > { %1516 = vrcp.f32 %v1038_v3 }
 0x462   : > { %v1515_v8 = vpop.eup %1514 }
 0x463   : > { %v1517_v10 = vpop.eup %1516 }
 0x464   : > { %v1045_v11 = vcombine.low %v1515_v8, %v1517_v10 }
 0x466   : > { %v1052_v13 = vrot.slane %v1045_v11, %v1051_v9 }
 0x468   : > { %v1053_v14 = vcombine.high %v1052_v13, %v1052_v13  ;;  %v1060_v15 = vrot.slane %v1052_v13, %v1051_v9 }
 0x46a   : > { %v1067_v16 = vrot.slane %v1053_v14, %v1051_v9  ;;  %v1071_v17 = vrot.slane %v1060_v15, %v1979_v38  ;;  %v1075_v18 = vrot.slane %v1060_v15, %v1976_v37 }
 0x46c   : > { %v1079_v19 = vrot.slane %v1067_v16, %v1979_v38  ;;  %v1083_v12 = vrot.slane %v1067_v16, %v1976_v37  ;;  %v1088_v20 = vmul.f32 %v1071_v17, %v1990_v52  ;;  %v1089_v21 = vmul.f32 %v1075_v18, %v1993_v53 }
 0x46e   : > { %v1090_v22 = vmul.f32 %v1079_v19, %v1984_v50  ;;  %v1091_v38 = vmul.f32 %v1083_v12, %v1987_v51  ;;  %1092 = vst [vmem:[%s256_s23] sm:$0xff] %v1088_v20  ;;  %1093 = vst [vmem:[%s256_s23 + $0x8] sm:$0xff] %v1089_v21 }
 0x470   : > { %1094 = vst [vmem:[%s256_s23 + $0x10] sm:$0xff] %v1090_v22  ;;  %1095 = vst [vmem:[%s256_s23 + $0x18] sm:$0xff] %v1091_v38 }
 0x471   : > { %1645 = shalt.err (!%p1642_p13)
}
 0x472   : > { %s1646_s20 = scalar_lea.hbm %s2024_s5, 512  ;;  %s1650_s7 = scalar_lea.hbm %s2076_s4, 1024 }
 0x473   : > { %p1647_p0 = scmp.ne.s32.totalorder %s2024_s5, %s1646_s20  ;;  %p1651_p9 = scmp.lt.u32.totalorder %s2024_s5, %s2076_s4 }
 0x474   : > { %p1652_p12 = scmp.lt.u32.totalorder %s1650_s7, %s1646_s20  ;;  %p1654_p1 = scmp.lt.u32.totalorder %s1646_s20, %s2024_s5 }
 0x475   : > { %p1648_p5 = pnand %p1647_p0, %p1889_p6 }
 0x476   : > { %p1653_p2 = por %p1652_p12, %p1651_p9 }
 0x477   : > { %p1649_p11 = pneg %p1648_p5 }
 0x478   : > { %p1655_p4 = por %p1654_p1, %p1653_p2 }
 0x47a   : > { %p1656_p8 = pnand %p1655_p4, %p1649_p11 }
 0x47c   : > { %1659 = shalt.err (!%p1656_p8)
}
 0x47d   : > { %s1720_s21 = smov 256   ;;  %s1721_s23 = smov 16  }
 0x47e   : > { %1338 = dma.vmem_to_hbm [thread:$0]  (%p1889_p6), %s2026_s24, 512, %s2024_s5, %s1097_s19, %s1720_s21, %s1720_s21, %s1721_s23  }
 0x47f PF: > { %s1126_s29 = sand.u32 1, %s1694_s15   ;;  %p2094_p3 = scmp.ne.s32.totalorder %s2081_s22, 0 }
 0x480   : > { %p2095_p7 = scmp.ge.s32.totalorder %s1706_s18, 2  ;;  %s1127_s27 = scalar_lea.sflag [#allocation4], %s1126_s29 }
 0x482   : > { %p1355_p10 = pnand %p2095_p7, %p2094_p3 }
 0x484   : > { %1689 = dma.done.wait (!%p1355_p10), %s1127_s27, 512  }
 0x485   : > { %1691 = vsyncadd (!%p1355_p10), %s1127_s27, 4294966784  ;;  %p19_p13 = scmp.ge.s32.totalorder %s1875_s8, 4   ;;  %s2096_s15 = smov %s1698_s16 }
 0x486   : > { %s2097_s16 = smov %s1702_s17  ;;  %s2098_s17 = smov %s1885_s11 }
 0x487   : > { %s2099_s18 = smov %s1875_s8  ;;  %21 = sbr.rel (!%p19_p13) target bundleno = 7 (0x7), region = 93 }
 0x48e   :  { %1132 = vsyncpa [#allocation3], 1 }
 0x48f   :  { %1134 = vsyncpa [#allocation3 + $0x1], 1 }
 0x490   :  { %1135 = vsyncpa [#allocation6], 1 }
 0x491   :  { %1136 = vsyncpa [#allocation9], 1 }
 0x492   :  { %1137 = vsyncpa [#allocation4], 1 }
 0x493   :  { %1139 = vsyncpa [#allocation4 + $0x1], 1 }

</bundles_post_ra>
